<compile_context>
chip_gen: v7x
topology: tpu7x:2x2x1
jax: 0.10.0
libtpu: 0.0.40
codegen_flags: <defaults>
</compile_context>

<pallas_src>
import functools

import jax
import jax.numpy as jnp
from jax.experimental import pallas as pl
from jax.experimental.pallas import tpu as pltpu

_LANE = 128
_SUBLANE = 8


def _round_up(x, m):
    return ((x + m - 1) // m) * m


def _policy_head_kernel(h_ref, w_ref, b_ref, o_ref):
    # h_ref: (Bp, Hp) bf16, resident across the N grid.
    # w_ref: (Hp, TN) bf16 streamed weight tile.
    # b_ref: (1, TN) f32 bias tile.   o_ref: (Bp, TN) f32 output tile.
    acc = jnp.dot(h_ref[...], w_ref[...], preferred_element_type=jnp.float32)
    o_ref[...] = acc + b_ref[...]


def init_policy_head_params(key, n_hidden, n_legal, *, tn=512,
                            param_dtype=jnp.bfloat16):
    """One-time padded/packed parameters mimicking per-head nn.Linear init.

    Returns (params, meta):
      params["w"]: (Hp, Np) param_dtype, heads concatenated along N with each
                   head padded to a multiple of 128 lanes; padded ONCE here.
      params["b"]: (1, Np) float32 bias in the same layout.
      meta: static split/tiling info (head sizes, lane-aligned offsets, TN).
    """
    bound = 1.0 / (n_hidden ** 0.5)
    head_sizes = tuple(int(n) for n in n_legal.values())
    head_sizes_p = tuple(_round_up(n, _LANE) for n in head_sizes)

    head_offsets = []
    off = 0
    for n_p in head_sizes_p:
        head_offsets.append(off)
        off += n_p
    n_cat = off  # multiple of 128

    tn = max(_LANE, _round_up(min(int(tn), n_cat), _LANE))
    n_pad = _round_up(n_cat, tn)
    h_pad = _round_up(n_hidden, _LANE)

    w_full = jnp.zeros((h_pad, n_pad), jnp.float32)
    b_full = jnp.zeros((1, n_pad), jnp.float32)
    for i, (n_out, off_i) in enumerate(zip(head_sizes, head_offsets)):
        kw, kb = jax.random.split(jax.random.fold_in(key, i))
        # PyTorch stores W as (n_out, n_hidden); we keep the transposed layout
        # (n_hidden, n_out) so the kernel does h @ W directly (no in-kernel T).
        w = jax.random.uniform(kw, (n_hidden, n_out), jnp.float32, -bound, bound)
        b = jax.random.uniform(kb, (n_out,), jnp.float32, -bound, bound)
        w_full = w_full.at[:n_hidden, off_i:off_i + n_out].set(w)
        b_full = b_full.at[0, off_i:off_i + n_out].set(b)

    params = {"w": w_full.astype(param_dtype), "b": b_full}
    meta = {
        "head_sizes": head_sizes,
        "head_offsets": tuple(head_offsets),
        "tn": int(tn),
        "n_hidden": int(n_hidden),
    }
    return params, meta


@functools.partial(jax.jit, static_argnames=("head_sizes", "head_offsets", "tn"))
def policy_head_forward(h, w, b, *, head_sizes, head_offsets, tn):
    """h: (B, n_hidden).  w: (Hp, Np) pre-padded.  b: (1, Np) pre-padded.

    Returns a tuple of per-head outputs, each (B, n_out_i) f32, matching the
    PyTorch list [head(h) for head in self.heads] (up to bf16 weight rounding).
    """
    B, H = h.shape
    Hp, Np = w.shape
    assert Np % tn == 0 and Np == head_offsets[-1] + _round_up(head_sizes[-1], _LANE) or Np >= head_offsets[-1] + head_sizes[-1]

    # Only the (cheap) activation padding happens per call; weights were
    # padded once at init.
    Bp = _round_up(B, 2 * _SUBLANE)  # 16: friendly to bf16 sublane packing
    hp = jnp.zeros((Bp, Hp), w.dtype).at[:B, :H].set(h.astype(w.dtype))

    grid = (Np // tn,)
    flops = 2 * Bp * Hp * Np
    bytes_accessed = (hp.size * hp.dtype.itemsize
                      + w.size * w.dtype.itemsize
                      + b.size * b.dtype.itemsize
                      + Bp * Np * 4)

    out_p = pl.pallas_call(
        _policy_head_kernel,
        out_shape=jax.ShapeDtypeStruct((Bp, Np), jnp.float32),
        grid=grid,
        in_specs=[
            pl.BlockSpec((Bp, Hp), lambda j: (0, 0)),   # h resident in VMEM
            pl.BlockSpec((Hp, tn), lambda j: (0, j)),   # stream weight tiles
            pl.BlockSpec((1, tn), lambda j: (0, j)),    # matching bias tile
        ],
        out_specs=pl.BlockSpec((Bp, tn), lambda j: (0, j)),
        compiler_params=pltpu.CompilerParams(
            dimension_semantics=("parallel",),          # megacore on v7x
        ),
        cost_estimate=pl.CostEstimate(
            flops=flops, transcendentals=0, bytes_accessed=bytes_accessed),
    )(hp, w, b)

    # Per-head splits: each offset is a multiple of 128 -> lane-aligned slice;
    # only the tiny tail trim is unaligned (outside the hot kernel path).
    outs = []
    for n, off in zip(head_sizes, head_offsets):
        outs.append(out_p[:B, off:off + n])
    return tuple(outs)


if __name__ == "__main__":
    # Small synthetic config: 3 action heads over a 32-dim hidden state.
    n_hidden = 32
    n_legal = {"move": 5, "attack": 3, "use": 7}
    batch = 4

    key = jax.random.PRNGKey(0)
    k_h, k_p = jax.random.split(key)

    h = jax.random.normal(k_h, (batch, n_hidden), jnp.float32)
    # tn=128 so the tiny demo still exercises a multi-step, pipelined N grid.
    params, meta = init_policy_head_params(k_p, n_hidden, n_legal, tn=128)

    outs = policy_head_forward(
        h, params["w"], params["b"],
        head_sizes=meta["head_sizes"],
        head_offsets=meta["head_offsets"],
        tn=meta["tn"],
    )
    outs = jax.block_until_ready(outs)

    # Reference check against plain JAX using the same bf16 weights
    # (same math as the PyTorch module, up to the bf16 weight cast).
    ok = True
    h_bf = h.astype(params["w"].dtype)
    for (name, n), off, o in zip(n_legal.items(), meta["head_offsets"], outs):
        w_i = params["w"][:n_hidden, off:off + n]
        b_i = params["b"][0, off:off + n]
        ref = jnp.dot(h_bf, w_i, preferred_element_type=jnp.float32) + b_i
        ok &= bool(jnp.allclose(o, ref, atol=1e-3, rtol=1e-3))
        ok &= (o.shape == (batch, n))

    if ok:
        print("KERNEL_OK")
</pallas_src>

<mosaic_0001>
module attributes {stable_mosaic.version = 11 : i64} {
  func.func @_policy_head_kernel(%arg0: i32, %arg1: memref<16x128xbf16, #tpu.memory_space<vmem>>, %arg2: memref<128x128xbf16, #tpu.memory_space<vmem>>, %arg3: memref<1x128xf32, #tpu.memory_space<vmem>>, %arg4: memref<16x128xf32, #tpu.memory_space<vmem>>) attributes {dimension_semantics = [#tpu.dimension_semantics<parallel>], iteration_bounds = array<i64: 3>, scalar_prefetch = 0 : i64, scratch_operands = 0 : i64, tpu.core_type = #tpu.core_type<tc>, window_params = [{pipeline_mode = #tpu.pipeline_mode<synchronous>, transform_indices = @transform_0, window_bounds = array<i64: 16, 128>}, {transform_indices = @transform_1, window_bounds = array<i64: 128, 128>}, {transform_indices = @transform_2, window_bounds = array<i64: 1, 128>}, {transform_indices = @transform_3, window_bounds = array<i64: 16, 128>}]} {
    %c0 = arith.constant 0 : index
    %c0_0 = arith.constant 0 : index
    %0 = vector.load %arg1[%c0, %c0_0] : memref<16x128xbf16, #tpu.memory_space<vmem>>, vector<16x128xbf16>
    %c0_1 = arith.constant 0 : index
    %c0_2 = arith.constant 0 : index
    %1 = vector.load %arg2[%c0_1, %c0_2] : memref<128x128xbf16, #tpu.memory_space<vmem>>, vector<128x128xbf16>
    %cst = arith.constant dense<0.000000e+00> : vector<16x128xf32>
    %2 = tpu.matmul %0, %1, %cst {dimension_numbers = #tpu.dot_dimension_numbers<[1], [0], [0], [1], [0, 0, 1, 1], [], []>} : vector<16x128xbf16>, vector<128x128xbf16>, vector<16x128xf32> -> vector<16x128xf32>
    %c0_3 = arith.constant 0 : index
    %c0_4 = arith.constant 0 : index
    %3 = vector.load %arg3[%c0_3, %c0_4] : memref<1x128xf32, #tpu.memory_space<vmem>>, vector<1x128xf32>
    %4 = vector.broadcast %3 : vector<1x128xf32> to vector<16x128xf32>
    %5 = arith.addf %2, %4 : vector<16x128xf32>
    %c0_5 = arith.constant 0 : index
    %c0_6 = arith.constant 0 : index
    %6 = vector.load %arg4[%c0_5, %c0_6] : memref<16x128xf32, #tpu.memory_space<vmem>>, vector<16x128xf32>
    tpu.vector_store %arg4[%c0_5, %c0_6], %5 {strides = array<i32>} : memref<16x128xf32, #tpu.memory_space<vmem>>, vector<16x128xf32>,
    return
  }
  func.func @transform_0(%arg0: i32) -> (i32, i32) {
    %c0_i32 = arith.constant 0 : i32
    %c0_i32_0 = arith.constant 0 : i32
    %c0_i32_1 = arith.constant 0 : i32
    return %c0_i32, %c0_i32_0 : i32, i32
  }
  func.func @transform_1(%arg0: i32) -> (i32, i32) {
    %c0_i32 = arith.constant 0 : i32
    %c0_i32_0 = arith.constant 0 : i32
    return %c0_i32, %arg0 : i32, i32
  }
  func.func @transform_2(%arg0: i32) -> (i32, i32) {
    %c0_i32 = arith.constant 0 : i32
    %c0_i32_0 = arith.constant 0 : i32
    return %c0_i32, %arg0 : i32, i32
  }
  func.func @transform_3(%arg0: i32) -> (i32, i32) {
    %c0_i32 = arith.constant 0 : i32
    %c0_i32_0 = arith.constant 0 : i32
    return %c0_i32, %arg0 : i32, i32
  }
}

</mosaic_0001>

<bundles_post_ra>
// kernel: policy_head_forward.1
= control target key start
LH: loop header
LB: loop body
LE: loop exit
PB: predicated region body
PF: predicated region fallthrough
CT: control target
= control target key end

     0   :  { %8 = vsyncpa [#allocation3], 0  ;;  %s764_s0 = inlined_call_operand.vmem [shape: bf16[16,128], index: 0, kind: input, shape index: {}]   ;;  %s765_s1 = inlined_call_operand.hbm [shape: bf16[128,384], index: 1, kind: input, shape index: {}]   ;;  %s766_s2 = inlined_call_operand.vmem [shape: f32[1,384], index: 2, kind: input, shape index: {}]   ;;  %s767_s3 = inlined_call_operand.vmem [shape: f32[16,384], index: 3, kind: output, shape index: {}]  }
   0x1   :  { %10 = vsyncpa [#allocation3 + $0x1], 0  ;;  %s633_s12 = smov 0   ;;  %s635_s13 = smov 0  }
   0x2   :  { %s637_s14 = smov 0   ;;  %s639_s15 = smov 0  }
   0x3 LB: > { %s652_s16 = sadd.s32 4294967295, %s605_s15   ;;  %s655_s17 = sadd.s32 1, %s605_s15   ;;  %s605_s15 = sphi %s639_s15, %s776_s15   ;;  %s601_s14 = sphi %s637_s14, %s775_s14   ;;  %s597_s13 = sphi %s635_s13, %s774_s13   ;;  %s593_s12 = sphi %s633_s12, %s773_s12  }
   0x4   : > { %s41_s18 = ssub.s32 %s605_s15, %s655_s17  ;;  %s44_s19 = sadd.s32 1, %s601_s14 }
   0x5   : > { %p42_p0 = scmp.eq.s32.totalorder %s41_s18, 0  ;;  %p51_p1 = scmp.ne.s32.totalorder %s601_s14, %s597_s13 }
   0x6   : > { %p52_p2 = scmp.eq.s32.totalorder %s605_s15, 0  ;;  %p57_p3 = scmp.ne.s32.totalorder %s597_s13, %s593_s12 }
   0x7   : > { %s665_s20 = scalar_select %p42_p0, %s601_s14, %s44_s19  }
   0x8   : > { %p667_p4 = por %p52_p2, %p51_p1  ;;  %p58_p5 = scmp.eq.s32.totalorder %s652_s16, 0 }
   0x9   : > { %p107_p6 = scmp.eq.s32.totalorder %s652_s16, 2  ;;  %p494_p8 = scmp.lt.s32.totalorder %s605_s15, 3 }
   0xa   : > { %p673_p7 = por %p58_p5, %p57_p3  ;;  %s136_s24 = sand.u32 1, %s601_s14  }
   0xb   : > { %p678_p9 = por %p107_p6, %p51_p1  ;;  %s440_s25 = sshll.u32 %s136_s24, 6 }
   0xc   : > { %s441_s26 = sshll.u32 %s605_s15, 6  ;;  %s140_s30 = scalar_lea.vmem [#allocation2], %s440_s25 }
   0xd   : > { %s770_s23 = scalar_select %p678_p9, 1, 0 }
   0xe   : > { %s687_s29 = scalar_lea.hbm %s765_s1, %s441_s26  ;;  %s146_s4 = sshll.u32 %s140_s30, 4  ;;  %s689_s4 = int_to_ptr.vmem [resolvable:$true] %s146_s4 }
   0xf   : > { %p693_p10 = pnand %p494_p8, %p667_p4  ;;  %s697_s6 = scalar_lea.sflag [#allocation3], %s136_s24 }
  0x10   : > { %s541_s7 = scalar_lea.hbm %s687_s29, 1024  ;;  %s546_s10 = scalar_lea.hbm %s765_s1, 3072 }
  0x11   : > { %p542_p11 = scmp.ne.s32.totalorder %s687_s29, %s541_s7  ;;  %p543_p12 = pneg %p693_p10 }
  0x12   : > { %p547_p1 = scmp.lt.u32.totalorder %s687_s29, %s765_s1  ;;  %p548_p2 = scmp.lt.u32.totalorder %s546_s10, %s541_s7 }
  0x13   : > { %p544_p13 = pnand %p543_p12, %p542_p11  ;;  %p550_p4 = scmp.lt.u32.totalorder %s541_s7, %s687_s29 }
  0x14   : > { %p549_p3 = por %p548_p2, %p547_p1 }
  0x15   : > { %p545_p0 = pneg %p544_p13 }
  0x16   : > { %p551_p5 = por %p550_p4, %p549_p3 }
  0x18   : > { %p552_p6 = pnand %p551_p5, %p545_p0 }
  0x1a   : > { %555 = shalt.err (!%p552_p6)
}
  0x1b   : > { %s556_s18 = scalar_lea.vmem %s689_s4, 1024  ;;  %s607_s19 = smov [#allocation2]  }
  0x1c   : > { %p557_p8 = scmp.ne.s32.totalorder %s689_s4, %s556_s18  ;;  %s561_s21 = sshll.u32 %s607_s19, 4  ;;  %s562_s21 = int_to_ptr.vmem [resolvable:$false] %s561_s21 }
  0x1d   : > { %s563_s24 = scalar_lea.vmem %s562_s21, 2048  ;;  %p564_p9 = scmp.lt.s32.totalorder %s689_s4, %s562_s21 }
  0x1e   : > { %p559_p11 = pnand %p557_p8, %p543_p12  ;;  %p565_p1 = scmp.lt.s32.totalorder %s563_s24, %s556_s18 }
  0x20   : > { %p560_p13 = pneg %p559_p11  ;;  %p566_p2 = por %p565_p1, %p564_p9 }
  0x22   : > { %p567_p3 = pnand %p566_p2, %p560_p13 }
  0x24   : > { %570 = shalt.err (!%p567_p3)
}
  0x25   : > { %s608_s25 = smov 192   ;;  %s609_s26 = smov 64  }
  0x26   : > { %s610_s27 = smov 4   ;;  %p442_p12 = scmp.ge.s32.totalorder %s605_s15, 1 }
  0x27   : > { %493 = dma.hbm_to_vmem [thread:$0]  (!%p693_p10), %s687_s29, 1024, %s689_s4, %s697_s6, %s608_s25, %s609_s26, %s610_s27  }
  0x28   : > { %p160_p0 = scmp.lt.s32.totalorder %s605_s15, 4 }
  0x2a   : > { %p161_p4 = pnand %p442_p12, %p160_p0 }
  0x2b   : > { %s728_s28 = sand.u32 (!%p161_p4), 1, %s597_s13  }
  0x2c   : > { %164 = sbr.rel (%p161_p4) target bundleno = 310 (0x136), region = 32  ;;  %s443_s30 = sshll.u32 (!%p161_p4), %s728_s28, 6 }
  0x2d   : > { %s167_s7 = scalar_lea.sflag (!%p161_p4), [#allocation3], %s728_s28  ;;  %s170_s8 = scalar_lea.vmem (!%p161_p4), [#allocation2], %s443_s30 }
  0x33   : > { %588 = dma.done.wait (%p673_p7), %s167_s7, 1024  }
  0x34   : > { %590 = vsyncadd (%p673_p7), %s167_s7, 4294966272  ;;  %v611_v0 = vmov 0.0   ;;  %vm612_vm0 = vmmov 0   ;;  %v532_v1 = vld [vmem:[%s170_s8] sm:$0xff]   ;;  %v533_v2 = vld [vmem:[%s170_s8 + $0x8] sm:$0xff]   ;;  %p195_p7 = scmp.lt.s32.totalorder %s652_s16, 2 }
  0x35   : > { %468 = vmatprep.subr.bf16.mxu0 %v611_v0  ;;  %484 = vmatprep.mubr.msk.bf16.mxu0 %vm612_vm0, %v611_v0  ;;  %v534_v3 = vld [vmem:[%s170_s8 + $0x10] sm:$0xff]   ;;  %v535_v4 = vld [vmem:[%s170_s8 + $0x18] sm:$0xff]   ;;  %v536_v5 = vld [vmem:[%s170_s8 + $0x20] sm:$0xff]   ;;  %s444_s9 = sshll.u32 %s728_s28, 4  ;;  %p772_p9 = scmp.ne.s32.totalorder %s770_s23, 0 }
  0x36   : > { %469 = vmatpush3.bf16.msra.mxu0 %v532_v1  ;;  %v537_v6 = vld [vmem:[%s170_s8 + $0x28] sm:$0xff]   ;;  %v538_v7 = vld [vmem:[%s170_s8 + $0x30] sm:$0xff]   ;;  %v539_v8 = vld [vmem:[%s170_s8 + $0x38] sm:$0xff]   ;;  %s196_s29 = scalar_select %p195_p7, %s652_s16, 2 }
  0x37   : > { %470 = vmatprep.subr.bf16.mxu0 %v611_v0  ;;  %v540_v9 = vld [vmem:[%s764_s0] sm:$0xff]   ;;  %s194_s10 = scalar_lea.vmem [#allocation4], %s444_s9  ;;  %s456_s11 = sshll.u32 (%p772_p9), %s652_s16, 3 }
  0x38   : > { %s197_s6 = scalar_lea.vmem %s766_s2, %s196_s29  ;;  %s329_s19 = scalar_lea.vmem (%p772_p9), %s767_s3, %s456_s11 }
  0x39   : > { %v445_v10 = vld [vmem:[%s197_s6] ss:$0 sm:$0xff] }
  0x3a   : > { %471 = vmatpush3.bf16.msra.mxu0 %v533_v2 }
  0x3b   : > { %472 = vmatprep.subr.bf16.mxu0 %v611_v0 }
  0x3e   : > { %473 = vmatpush3.bf16.msra.mxu0 %v534_v3 }
  0x3f   : > { %474 = vmatprep.subr.bf16.mxu0 %v611_v0 }
  0x42   : > { %475 = vmatpush3.bf16.msra.mxu0 %v535_v4 }
  0x43   : > { %476 = vmatprep.subr.bf16.mxu0 %v611_v0 }
  0x46   : > { %477 = vmatpush3.bf16.msra.mxu0 %v536_v5 }
  0x47   : > { %478 = vmatprep.subr.bf16.mxu0 %v611_v0 }
  0x4a   : > { %479 = vmatpush3.bf16.msra.mxu0 %v537_v6 }
  0x4b   : > { %480 = vmatprep.subr.bf16.mxu0 %v611_v0 }
  0x4e   : > { %481 = vmatpush3.bf16.msra.mxu0 %v538_v7 }
  0x4f   : > { %482 = vmatprep.subr.bf16.mxu0 %v611_v0 }
  0x52   : > { %483 = vmatpush3.bf16.msra.mxu0 %v539_v8 }
  0x55   : > { %485 = vmatmul.mubr.bf16.vlgmr.msra.gmra.mrb[0].mxu0 %v540_v9 }
 0x127   : > { %327 = sbr.rel (!%p772_p9) target bundleno = 310 (0x136), region = 40 }
 0x128   : > { %v312_v11 = vpop.f32.mrb[0].mxu0 }
 0x129   : > { %v313_v12 = vadd.f32 %v445_v10, %v312_v11  ;;  %v486_v13 = vpop.f32.mrb[1].mxu0 }
 0x12a   : > { %v315_v14 = vpop.f32.mrb[2].mxu0 }
 0x12b   : > { %319 = vst [vmem:[%s194_s10] sm:$0xff] %v313_v12  ;;  %v316_v15 = vadd.f32 %v445_v10, %v315_v14  ;;  %v487_v16 = vpop.f32.mrb[3].mxu0 }
 0x12d   : > { %320 = vst [vmem:[%s194_s10 + $0x8] sm:$0xff] %v316_v15 }
 0x132   : > { %v359_v17 = vld [vmem:[%s194_s10] sm:$0xff] }
 0x133   : > { %360 = vst [vmem:[%s329_s19] sm:$0xff] %v359_v17 }
 0x134   : > { %v361_v18 = vld [vmem:[%s194_s10 + $0x8] sm:$0xff] }
 0x135   : > { %362 = vst [vmem:[%s329_s19 + $0x18] sm:$0xff] %v361_v18 }
 0x136 PF: > { %p13_p10 = scmp.ge.s32.totalorder %s655_s17, 5   ;;  %s773_s12 = smov %s597_s13 }
 0x137   : > { %s774_s13 = smov %s601_s14  ;;  %s775_s14 = smov %s665_s20 }
 0x138   : > { %s776_s15 = smov %s655_s17  ;;  %15 = sbr.rel (!%p13_p10) target bundleno = 3 (0x3), region = 113 }
 0x13f   :  { %378 = vsyncpa [#allocation3], 1 }
 0x140   :  { %380 = vsyncpa [#allocation3 + $0x1], 1 }

</bundles_post_ra>
